<compile_context>
chip_gen: v7x
topology: tpu7x:2x2x1
jax: 0.10.0
libtpu: 0.0.40
codegen_flags: <defaults>
</compile_context>

<pallas_src>
import jax
import jax.numpy as jnp
from jax.experimental import pallas as pl
from jax.experimental.pallas import tpu as pltpu


def _pick_batch_block(bs, cap=8):
    """Largest divisor of bs that is <= cap (examples fused per grid step)."""
    for c in range(min(bs, cap), 0, -1):
        if bs % c == 0:
            return c
    return 1


# ---------------------------------------------------------------------------
# Kernel 1: fused dim_reduction + relu + entity pooling + wide bilinear lhs
#   cfo  = relu(x @ W_dr + b_dr)                     (block_b*doc_len, F)
#   e_b  = mask_b @ cfo_b                            (E, F)      per example
#   t_b  = e_b @ W2          (W2[g, l*F+f] = W[l,f,g])  (E, L*F)  per example
# ---------------------------------------------------------------------------
def _make_featurize_kernel(block_b, doc_len):
    def kernel(x_ref, wdr_ref, bdr_ref, w2_ref, mask_ref, ent_ref, t_ref):
        # x: (block_b*doc_len, H) f32; wdr: (H, F) bf16; bdr: (1, F) f32
        # w2: (F, L*F) bf16; mask: (block_b, E, doc_len) f32
        x = x_ref[...].astype(jnp.bfloat16)
        cfo = jnp.dot(x, wdr_ref[...], preferred_element_type=jnp.float32)
        cfo = jnp.maximum(cfo + bdr_ref[...], 0.0).astype(jnp.bfloat16)
        for b in range(block_b):                       # small static unroll
            m = mask_ref[b].astype(jnp.bfloat16)       # (E, doc_len)
            rows = cfo[b * doc_len:(b + 1) * doc_len, :]
            e = jnp.dot(m, rows, preferred_element_type=jnp.float32)  # (E, F)
            e_bf = e.astype(jnp.bfloat16)
            ent_ref[b] = e_bf
            t_ref[b] = jnp.dot(e_bf, w2_ref[...],
                               preferred_element_type=jnp.float32
                               ).astype(jnp.bfloat16)  # (E, L*F) lane-dense
    return kernel


# ---------------------------------------------------------------------------
# Kernel 2: wide bilinear contraction + sigmoid + masked BCEWithLogits loss
#   logits[i, j*L+l] = sum_f e[i,f] * t_r[j*L+l, f] + b[l]
#   (t_r is the free (bs, E*L, F) view of kernel-1's t)
# ---------------------------------------------------------------------------
def _make_pair_loss_kernel(block_b, n_labels):
    inv_labels = 1.0 / float(n_labels)

    def kernel(ent_ref, tr_ref, brow_ref, labels_ref, lmask_ref, r_ref,
               probs_ref, loss_ref):
        for b in range(block_b):                       # small static unroll
            e = ent_ref[b]                             # (E, F)     bf16
            tr = tr_ref[b]                             # (E*L, F)   bf16
            # one wide matmul replaces the per-label loop: N = E*L lanes
            logits = jax.lax.dot_general(
                e, tr, (((1,), (1,)), ((), ())),
                preferred_element_type=jnp.float32)    # (E, E*L)
            logits = logits + brow_ref[...]            # bias b[l] per column
            probs_ref[b] = jax.nn.sigmoid(logits)      # lane-dense store
            y = labels_ref[b]                          # (E, E*L) f32
            # stable BCEWithLogits: max(x,0) - x*y + log1p(exp(-|x|))
            bce = (jnp.maximum(logits, 0.0) - logits * y
                   + jnp.log1p(jnp.exp(-jnp.abs(logits))))
            # group-sum over the L labels of each (i, j) pair via a constant
            # 0/1 matmul (no relayouts): grp[i, j] = sum_l bce[i, j, l]
            grp = jnp.dot(bce, r_ref[...], preferred_element_type=jnp.float32)
            lm = lmask_ref[b]                          # (E, E)
            num = jnp.sum(grp * lm, keepdims=True)     # (1, 1)
            den = jnp.maximum(jnp.sum(lm, keepdims=True), 1.0)  # NaN guard
            loss_ref[b] = num * inv_labels / den
    return kernel


# ---------------------------------------------------------------------------
# Wrapper
# ---------------------------------------------------------------------------
@jax.jit
def ski_forward(encoder_outputs, batch_ent_mask, labels, label_mask, params):
    wdr, bdr = params["w_dr"], params["b_dr"]
    wbili, bbili = params["w_bili"], params["b_bili"]

    bs, doc_len, hidden = encoder_outputs.shape
    E = batch_ent_mask.shape[1]
    F = wdr.shape[1]
    L = wbili.shape[0]

    block_b = _pick_batch_block(bs)
    nb = bs // block_b

    # ---- free / tiny wrapper-side precomputation (no big-tensor transposes) --
    x2d = encoder_outputs.reshape(bs * doc_len, hidden)          # contiguous
    wdr_bf = wdr.astype(jnp.bfloat16)
    # W2[g, l*F + f] = W[l, f, g]  -> t[j, l*F+f] = sum_g e[j,g] W[l,f,g]
    w2 = jnp.transpose(wbili, (2, 0, 1)).reshape(F, L * F).astype(jnp.bfloat16)

    ent, t = pl.pallas_call(
        _make_featurize_kernel(block_b, doc_len),
        out_shape=(
            jax.ShapeDtypeStruct((bs, E, F), jnp.bfloat16),
            jax.ShapeDtypeStruct((bs, E, L * F), jnp.bfloat16),
        ),
        grid=(nb,),
        in_specs=[
            pl.BlockSpec((block_b * doc_len, hidden), lambda i: (i, 0)),
            pl.BlockSpec((hidden, F), lambda i: (0, 0)),
            pl.BlockSpec((1, F), lambda i: (0, 0)),
            pl.BlockSpec((F, L * F), lambda i: (0, 0)),
            pl.BlockSpec((block_b, E, doc_len), lambda i: (i, 0, 0)),
        ],
        out_specs=(
            pl.BlockSpec((block_b, E, F), lambda i: (i, 0, 0)),
            pl.BlockSpec((block_b, E, L * F), lambda i: (i, 0, 0)),
        ),
        compiler_params=pltpu.CompilerParams(
            dimension_semantics=("parallel",)),
    )(x2d, wdr_bf, bdr.reshape(1, F), w2, batch_ent_mask)

    # free contiguous views (row-major reinterpretation, no HBM transpose):
    t_r = t.reshape(bs, E * L, F)              # t_r[b, j*L+l, f] = t[b, j, l*F+f]
    labels_pk = labels.astype(jnp.float32).reshape(bs, E, E * L)
    brow = jnp.tile(bbili.astype(jnp.float32), E).reshape(1, E * L)   # b[l]
    r_mat = jnp.repeat(jnp.eye(E, dtype=jnp.float32), L, axis=0)      # (E*L, E)

    probs_pk, loss_pe = pl.pallas_call(
        _make_pair_loss_kernel(block_b, L),
        out_shape=(
            jax.ShapeDtypeStruct((bs, E, E * L), jnp.float32),
            jax.ShapeDtypeStruct((bs, 1, 1), jnp.float32),
        ),
        grid=(nb,),
        in_specs=[
            pl.BlockSpec((block_b, E, F), lambda i: (i, 0, 0)),
            pl.BlockSpec((block_b, E * L, F), lambda i: (i, 0, 0)),
            pl.BlockSpec((1, E * L), lambda i: (0, 0)),
            pl.BlockSpec((block_b, E, E * L), lambda i: (i, 0, 0)),
            pl.BlockSpec((block_b, E, E), lambda i: (i, 0, 0)),
            pl.BlockSpec((E * L, E), lambda i: (0, 0)),
        ],
        out_specs=(
            pl.BlockSpec((block_b, E, E * L), lambda i: (i, 0, 0)),
            pl.BlockSpec((block_b, 1, 1), lambda i: (i, 0, 0)),
        ),
        compiler_params=pltpu.CompilerParams(
            dimension_semantics=("parallel",)),
    )(ent, t_r, brow, labels_pk, label_mask.astype(jnp.float32), r_mat)

    probs = probs_pk.reshape(bs, E, E, L)      # free contiguous view
    loss = jnp.mean(loss_pe)
    return probs, loss


# ---------------------------------------------------------------------------
# Pure-JAX f32 reference (module semantics) used only for correctness checking.
# ---------------------------------------------------------------------------
def ski_reference(encoder_outputs, batch_ent_mask, labels, label_mask, params):
    wdr, bdr = params["w_dr"], params["b_dr"]
    wbili, bbili = params["w_bili"], params["b_bili"]
    cfo = jax.nn.relu(encoder_outputs @ wdr + bdr)
    ent = jnp.einsum("bed,bdf->bef", batch_ent_mask, cfo)
    logits = jnp.einsum("bif,lfg,bjg->bijl", ent, wbili, ent) + bbili
    probs = jax.nn.sigmoid(logits)
    bce = (jnp.maximum(logits, 0.0) - logits * labels
           + jnp.log1p(jnp.exp(-jnp.abs(logits))))
    per_pair = jnp.mean(bce, axis=-1)
    lpe = (jnp.sum(per_pair * label_mask, axis=(1, 2))
           / jnp.sum(label_mask, axis=(1, 2)))
    return probs, jnp.mean(lpe)


if __name__ == "__main__":
    bs, doc_len, hidden = 2, 16, 32
    concept_dim, max_ent_cnt, n_labels = 16, 4, 4

    key = jax.random.PRNGKey(0)
    keys = jax.random.split(key, 7)

    encoder_outputs = jax.random.normal(keys[0], (bs, doc_len, hidden),
                                        jnp.float32)
    # entity -> token averaging mask (rows normalized over selected tokens)
    raw = jax.random.uniform(keys[1], (bs, max_ent_cnt, doc_len))
    ent_tok = (raw > 0.7).astype(jnp.float32) + 1e-3
    batch_ent_mask = ent_tok / jnp.sum(ent_tok, axis=-1, keepdims=True)

    labels = jax.random.bernoulli(
        keys[2], 0.3, (bs, max_ent_cnt, max_ent_cnt, n_labels)
    ).astype(jnp.float32)
    label_mask = jnp.tile((1.0 - jnp.eye(max_ent_cnt, dtype=jnp.float32))[None],
                          (bs, 1, 1))

    params = {
        "w_dr": 0.1 * jax.random.normal(keys[3], (hidden, concept_dim),
                                        jnp.float32),
        "b_dr": 0.1 * jax.random.normal(keys[4], (concept_dim,), jnp.float32),
        "w_bili": 0.1 * jax.random.normal(
            keys[5], (n_labels, concept_dim, concept_dim), jnp.float32),
        "b_bili": 0.1 * jax.random.normal(keys[6], (n_labels,), jnp.float32),
    }

    probs, loss = ski_forward(encoder_outputs, batch_ent_mask, labels,
                              label_mask, params)
    jax.block_until_ready((probs, loss))

    ref_probs, ref_loss = ski_reference(encoder_outputs, batch_ent_mask,
                                        labels, label_mask, params)
    # MXU operands are bf16 (per perf review); f32 accumulation keeps the
    # error well under 2e-2 at these magnitudes.
    assert probs.shape == ref_probs.shape, "probs shape mismatch"
    assert jnp.allclose(probs, ref_probs, atol=2e-2, rtol=2e-2), "probs mismatch"
    assert jnp.allclose(loss, ref_loss, atol=2e-2, rtol=2e-2), "loss mismatch"
    print("KERNEL_OK")
</pallas_src>

<mosaic_0001>
module attributes {stable_mosaic.version = 11 : i64} {
  func.func @kernel(%arg0: i32, %arg1: memref<32x32xf32, #tpu.memory_space<vmem>>, %arg2: memref<32x16xbf16, #tpu.memory_space<vmem>>, %arg3: memref<1x16xf32, #tpu.memory_space<vmem>>, %arg4: memref<16x64xbf16, #tpu.memory_space<vmem>>, %arg5: memref<2x4x16xf32, #tpu.memory_space<vmem>>, %arg6: memref<2x4x16xbf16, #tpu.memory_space<vmem>>, %arg7: memref<2x4x64xbf16, #tpu.memory_space<vmem>>) attributes {dimension_semantics = [#tpu.dimension_semantics<parallel>], iteration_bounds = array<i64: 1>, scalar_prefetch = 0 : i64, scratch_operands = 0 : i64, tpu.core_type = #tpu.core_type<tc>, window_params = [{transform_indices = @transform_0, window_bounds = array<i64: 32, 32>}, {pipeline_mode = #tpu.pipeline_mode<synchronous>, transform_indices = @transform_1, window_bounds = array<i64: 32, 16>}, {pipeline_mode = #tpu.pipeline_mode<synchronous>, transform_indices = @transform_2, window_bounds = array<i64: 1, 16>}, {pipeline_mode = #tpu.pipeline_mode<synchronous>, transform_indices = @transform_3, window_bounds = array<i64: 16, 64>}, {transform_indices = @transform_4, window_bounds = array<i64: 2, 4, 16>}, {transform_indices = @transform_5, window_bounds = array<i64: 2, 4, 16>}, {transform_indices = @transform_6, window_bounds = array<i64: 2, 4, 64>}]} {
    %c0 = arith.constant 0 : index
    %c0_0 = arith.constant 0 : index
    %0 = vector.load %arg1[%c0, %c0_0] : memref<32x32xf32, #tpu.memory_space<vmem>>, vector<32x32xf32>
    %1 = arith.truncf %0 : vector<32x32xf32> to vector<32x32xbf16>
    %c0_1 = arith.constant 0 : index
    %c0_2 = arith.constant 0 : index
    %2 = vector.load %arg2[%c0_1, %c0_2] : memref<32x16xbf16, #tpu.memory_space<vmem>>, vector<32x16xbf16>
    %cst = arith.constant dense<0.000000e+00> : vector<32x16xf32>
    %3 = tpu.matmul %1, %2, %cst {dimension_numbers = #tpu.dot_dimension_numbers<[1], [0], [0], [1], [0, 0, 1, 1], [], []>} : vector<32x32xbf16>, vector<32x16xbf16>, vector<32x16xf32> -> vector<32x16xf32>
    %c0_3 = arith.constant 0 : index
    %c0_4 = arith.constant 0 : index
    %4 = vector.load %arg3[%c0_3, %c0_4] : memref<1x16xf32, #tpu.memory_space<vmem>>, vector<1x16xf32>
    %5 = vector.broadcast %4 : vector<1x16xf32> to vector<32x16xf32>
    %6 = arith.addf %3, %5 : vector<32x16xf32>
    %cst_5 = arith.constant 0.000000e+00 : f32
    %7 = vector.broadcast %cst_5 : f32 to vector<32x16xf32>
    %8 = arith.maximumf %6, %7 : vector<32x16xf32>
    %9 = arith.truncf %8 : vector<32x16xf32> to vector<32x16xbf16>
    %c0_6 = arith.constant 0 : index
    %c0_7 = arith.constant 0 : index
    %c0_8 = arith.constant 0 : index
    %10 = vector.load %arg5[%c0_6, %c0_7, %c0_8] : memref<2x4x16xf32, #tpu.memory_space<vmem>>, vector<1x4x16xf32>
    %11 = vector.shape_cast %10 : vector<1x4x16xf32> to vector<4x16xf32>
    %12 = arith.truncf %11 : vector<4x16xf32> to vector<4x16xbf16>
    %13 = vector.extract_strided_slice %9 {offsets = [0, 0], sizes = [16, 16], strides = [1, 1]} : vector<32x16xbf16> to vector<16x16xbf16>
    %cst_9 = arith.constant dense<0.000000e+00> : vector<4x16xf32>
    %14 = tpu.matmul %12, %13, %cst_9 {dimension_numbers = #tpu.dot_dimension_numbers<[1], [0], [0], [1], [0, 0, 1, 1], [], []>} : vector<4x16xbf16>, vector<16x16xbf16>, vector<4x16xf32> -> vector<4x16xf32>
    %15 = arith.truncf %14 : vector<4x16xf32> to vector<4x16xbf16>
    %c0_10 = arith.constant 0 : index
    %c0_11 = arith.constant 0 : index
    %c0_12 = arith.constant 0 : index
    %16 = vector.load %arg6[%c0_10, %c0_11, %c0_12] : memref<2x4x16xbf16, #tpu.memory_space<vmem>>, vector<1x4x16xbf16>
    %17 = vector.shape_cast %16 : vector<1x4x16xbf16> to vector<4x16xbf16>
    %18 = vector.shape_cast %15 : vector<4x16xbf16> to vector<1x4x16xbf16>
    tpu.vector_store %arg6[%c0_10, %c0_11, %c0_12], %18 {strides = array<i32>} : memref<2x4x16xbf16, #tpu.memory_space<vmem>>, vector<1x4x16xbf16>,
    %c0_13 = arith.constant 0 : index
    %c0_14 = arith.constant 0 : index
    %19 = vector.load %arg4[%c0_13, %c0_14] : memref<16x64xbf16, #tpu.memory_space<vmem>>, vector<16x64xbf16>
    %cst_15 = arith.constant dense<0.000000e+00> : vector<4x64xf32>
    %20 = tpu.matmul %15, %19, %cst_15 {dimension_numbers = #tpu.dot_dimension_numbers<[1], [0], [0], [1], [0, 0, 1, 1], [], []>} : vector<4x16xbf16>, vector<16x64xbf16>, vector<4x64xf32> -> vector<4x64xf32>
    %21 = arith.truncf %20 : vector<4x64xf32> to vector<4x64xbf16>
    %c0_16 = arith.constant 0 : index
    %c0_17 = arith.constant 0 : index
    %c0_18 = arith.constant 0 : index
    %22 = vector.load %arg7[%c0_16, %c0_17, %c0_18] : memref<2x4x64xbf16, #tpu.memory_space<vmem>>, vector<1x4x64xbf16>
    %23 = vector.shape_cast %22 : vector<1x4x64xbf16> to vector<4x64xbf16>
    %24 = vector.shape_cast %21 : vector<4x64xbf16> to vector<1x4x64xbf16>
    tpu.vector_store %arg7[%c0_16, %c0_17, %c0_18], %24 {strides = array<i32>} : memref<2x4x64xbf16, #tpu.memory_space<vmem>>, vector<1x4x64xbf16>,
    %c1 = arith.constant 1 : index
    %c0_19 = arith.constant 0 : index
    %c0_20 = arith.constant 0 : index
    %25 = vector.load %arg5[%c1, %c0_19, %c0_20] : memref<2x4x16xf32, #tpu.memory_space<vmem>>, vector<1x4x16xf32>
    %26 = vector.shape_cast %25 : vector<1x4x16xf32> to vector<4x16xf32>
    %27 = arith.truncf %26 : vector<4x16xf32> to vector<4x16xbf16>
    %28 = vector.extract_strided_slice %9 {offsets = [16, 0], sizes = [16, 16], strides = [1, 1]} : vector<32x16xbf16> to vector<16x16xbf16>
    %cst_21 = arith.constant dense<0.000000e+00> : vector<4x16xf32>
    %29 = tpu.matmul %27, %28, %cst_21 {dimension_numbers = #tpu.dot_dimension_numbers<[1], [0], [0], [1], [0, 0, 1, 1], [], []>} : vector<4x16xbf16>, vector<16x16xbf16>, vector<4x16xf32> -> vector<4x16xf32>
    %30 = arith.truncf %29 : vector<4x16xf32> to vector<4x16xbf16>
    %c1_22 = arith.constant 1 : index
    %c0_23 = arith.constant 0 : index
    %c0_24 = arith.constant 0 : index
    %31 = vector.load %arg6[%c1_22, %c0_23, %c0_24] : memref<2x4x16xbf16, #tpu.memory_space<vmem>>, vector<1x4x16xbf16>
    %32 = vector.shape_cast %31 : vector<1x4x16xbf16> to vector<4x16xbf16>
    %33 = vector.shape_cast %30 : vector<4x16xbf16> to vector<1x4x16xbf16>
    tpu.vector_store %arg6[%c1_22, %c0_23, %c0_24], %33 {strides = array<i32>} : memref<2x4x16xbf16, #tpu.memory_space<vmem>>, vector<1x4x16xbf16>,
    %c0_25 = arith.constant 0 : index
    %c0_26 = arith.constant 0 : index
    %34 = vector.load %arg4[%c0_25, %c0_26] : memref<16x64xbf16, #tpu.memory_space<vmem>>, vector<16x64xbf16>
    %cst_27 = arith.constant dense<0.000000e+00> : vector<4x64xf32>
    %35 = tpu.matmul %30, %34, %cst_27 {dimension_numbers = #tpu.dot_dimension_numbers<[1], [0], [0], [1], [0, 0, 1, 1], [], []>} : vector<4x16xbf16>, vector<16x64xbf16>, vector<4x64xf32> -> vector<4x64xf32>
    %36 = arith.truncf %35 : vector<4x64xf32> to vector<4x64xbf16>
    %c1_28 = arith.constant 1 : index
    %c0_29 = arith.constant 0 : index
    %c0_30 = arith.constant 0 : index
    %37 = vector.load %arg7[%c1_28, %c0_29, %c0_30] : memref<2x4x64xbf16, #tpu.memory_space<vmem>>, vector<1x4x64xbf16>
    %38 = vector.shape_cast %37 : vector<1x4x64xbf16> to vector<4x64xbf16>
    %39 = vector.shape_cast %36 : vector<4x64xbf16> to vector<1x4x64xbf16>
    tpu.vector_store %arg7[%c1_28, %c0_29, %c0_30], %39 {strides = array<i32>} : memref<2x4x64xbf16, #tpu.memory_space<vmem>>, vector<1x4x64xbf16>,
    return
  }
  func.func @transform_0(%arg0: i32) -> (i32, i32) {
    %c0_i32 = arith.constant 0 : i32
    %c0_i32_0 = arith.constant 0 : i32
    return %arg0, %c0_i32 : i32, i32
  }
  func.func @transform_1(%arg0: i32) -> (i32, i32) {
    %c0_i32 = arith.constant 0 : i32
    %c0_i32_0 = arith.constant 0 : i32
    %c0_i32_1 = arith.constant 0 : i32
    return %c0_i32, %c0_i32_0 : i32, i32
  }
  func.func @transform_2(%arg0: i32) -> (i32, i32) {
    %c0_i32 = arith.constant 0 : i32
    %c0_i32_0 = arith.constant 0 : i32
    %c0_i32_1 = arith.constant 0 : i32
    return %c0_i32, %c0_i32_0 : i32, i32
  }
  func.func @transform_3(%arg0: i32) -> (i32, i32) {
    %c0_i32 = arith.constant 0 : i32
    %c0_i32_0 = arith.constant 0 : i32
    %c0_i32_1 = arith.constant 0 : i32
    return %c0_i32, %c0_i32_0 : i32, i32
  }
  func.func @transform_4(%arg0: i32) -> (i32, i32, i32) {
    %c0_i32 = arith.constant 0 : i32
    %c0_i32_0 = arith.constant 0 : i32
    %c0_i32_1 = arith.constant 0 : i32
    return %arg0, %c0_i32, %c0_i32_0 : i32, i32, i32
  }
  func.func @transform_5(%arg0: i32) -> (i32, i32, i32) {
    %c0_i32 = arith.constant 0 : i32
    %c0_i32_0 = arith.constant 0 : i32
    %c0_i32_1 = arith.constant 0 : i32
    return %arg0, %c0_i32, %c0_i32_0 : i32, i32, i32
  }
  func.func @transform_6(%arg0: i32) -> (i32, i32, i32) {
    %c0_i32 = arith.constant 0 : i32
    %c0_i32_0 = arith.constant 0 : i32
    %c0_i32_1 = arith.constant 0 : i32
    return %arg0, %c0_i32, %c0_i32_0 : i32, i32, i32
  }
}

module attributes {stable_mosaic.version = 11 : i64} {
  func.func @kernel(%arg0: i32, %arg1: memref<2x4x16xbf16, #tpu.memory_space<vmem>>, %arg2: memref<2x16x16xbf16, #tpu.memory_space<vmem>>, %arg3: memref<1x16xf32, #tpu.memory_space<vmem>>, %arg4: memref<2x4x16xf32, #tpu.memory_space<vmem>>, %arg5: memref<2x4x4xf32, #tpu.memory_space<vmem>>, %arg6: memref<16x4xf32, #tpu.memory_space<vmem>>, %arg7: memref<2x4x16xf32, #tpu.memory_space<vmem>>, %arg8: memref<2x1x1xf32, #tpu.memory_space<vmem>>) attributes {dimension_semantics = [#tpu.dimension_semantics<parallel>], iteration_bounds = array<i64: 1>, scalar_prefetch = 0 : i64, scratch_operands = 0 : i64, tpu.core_type = #tpu.core_type<tc>, window_params = [{transform_indices = @transform_0, window_bounds = array<i64: 2, 4, 16>}, {transform_indices = @transform_1, window_bounds = array<i64: 2, 16, 16>}, {pipeline_mode = #tpu.pipeline_mode<synchronous>, transform_indices = @transform_2, window_bounds = array<i64: 1, 16>}, {transform_indices = @transform_3, window_bounds = array<i64: 2, 4, 16>}, {transform_indices = @transform_4, window_bounds = array<i64: 2, 4, 4>}, {pipeline_mode = #tpu.pipeline_mode<synchronous>, transform_indices = @transform_5, window_bounds = array<i64: 16, 4>}, {transform_indices = @transform_6, window_bounds = array<i64: 2, 4, 16>}, {transform_indices = @transform_7, window_bounds = array<i64: 2, 1, 1>}]} {
    %c0 = arith.constant 0 : index
    %c0_0 = arith.constant 0 : index
    %c0_1 = arith.constant 0 : index
    %0 = vector.load %arg1[%c0, %c0_0, %c0_1] : memref<2x4x16xbf16, #tpu.memory_space<vmem>>, vector<1x4x16xbf16>
    %1 = vector.shape_cast %0 : vector<1x4x16xbf16> to vector<4x16xbf16>
    %c0_2 = arith.constant 0 : index
    %c0_3 = arith.constant 0 : index
    %c0_4 = arith.constant 0 : index
    %2 = vector.load %arg2[%c0_2, %c0_3, %c0_4] : memref<2x16x16xbf16, #tpu.memory_space<vmem>>, vector<1x16x16xbf16>
    %3 = vector.shape_cast %2 : vector<1x16x16xbf16> to vector<16x16xbf16>
    %cst = arith.constant dense<0.000000e+00> : vector<4x16xf32>
    %4 = tpu.matmul %1, %3, %cst {dimension_numbers = #tpu.dot_dimension_numbers<[1], [1], [0], [0], [0, 0, 1, 0], [], []>} : vector<4x16xbf16>, vector<16x16xbf16>, vector<4x16xf32> -> vector<4x16xf32>
    %c0_5 = arith.constant 0 : index
    %c0_6 = arith.constant 0 : index
    %5 = vector.load %arg3[%c0_5, %c0_6] : memref<1x16xf32, #tpu.memory_space<vmem>>, vector<1x16xf32>
    %6 = vector.broadcast %5 : vector<1x16xf32> to vector<4x16xf32>
    %7 = arith.addf %4, %6 : vector<4x16xf32>
    %8 = arith.negf %7 : vector<4x16xf32>
    %9 = math.exp %8 : vector<4x16xf32>
    %cst_7 = arith.constant 1.000000e+00 : f32
    %10 = vector.broadcast %cst_7 : f32 to vector<4x16xf32>
    %11 = arith.addf %10, %9 : vector<4x16xf32>
    %12 = arith.divf %10, %11 : vector<4x16xf32>
    %c0_8 = arith.constant 0 : index
    %c0_9 = arith.constant 0 : index
    %c0_10 = arith.constant 0 : index
    %13 = vector.load %arg7[%c0_8, %c0_9, %c0_10] : memref<2x4x16xf32, #tpu.memory_space<vmem>>, vector<1x4x16xf32>
    %14 = vector.shape_cast %13 : vector<1x4x16xf32> to vector<4x16xf32>
    %15 = vector.shape_cast %12 : vector<4x16xf32> to vector<1x4x16xf32>
    tpu.vector_store %arg7[%c0_8, %c0_9, %c0_10], %15 {strides = array<i32>} : memref<2x4x16xf32, #tpu.memory_space<vmem>>, vector<1x4x16xf32>,
    %c0_11 = arith.constant 0 : index
    %c0_12 = arith.constant 0 : index
    %c0_13 = arith.constant 0 : index
    %16 = vector.load %arg4[%c0_11, %c0_12, %c0_13] : memref<2x4x16xf32, #tpu.memory_space<vmem>>, vector<1x4x16xf32>
    %17 = vector.shape_cast %16 : vector<1x4x16xf32> to vector<4x16xf32>
    %cst_14 = arith.constant 0.000000e+00 : f32
    %18 = vector.broadcast %cst_14 : f32 to vector<4x16xf32>
    %19 = arith.maximumf %7, %18 : vector<4x16xf32>
    %20 = arith.mulf %7, %17 : vector<4x16xf32>
    %21 = arith.subf %19, %20 : vector<4x16xf32>
    %22 = math.absf %7 : vector<4x16xf32>
    %cst_15 = arith.constant 0.000000e+00 : f32
    %23 = vector.broadcast %cst_15 : f32 to vector<4x16xf32>
    %24 = arith.subf %23, %22 : vector<4x16xf32>
    %25 = math.exp %24 : vector<4x16xf32>
    %26 = math.log1p %25 : vector<4x16xf32>
    %27 = arith.addf %21, %26 : vector<4x16xf32>
    %c0_16 = arith.constant 0 : index
    %c0_17 = arith.constant 0 : index
    %28 = vector.load %arg6[%c0_16, %c0_17] : memref<16x4xf32, #tpu.memory_space<vmem>>, vector<16x4xf32>
    %cst_18 = arith.constant dense<0.000000e+00> : vector<4x4xf32>
    %29 = tpu.matmul %27, %28, %cst_18 {dimension_numbers = #tpu.dot_dimension_numbers<[1], [0], [0], [1], [0, 0, 1, 1], [], []>} : vector<4x16xf32>, vector<16x4xf32>, vector<4x4xf32> -> vector<4x4xf32>
    %c0_19 = arith.constant 0 : index
    %c0_20 = arith.constant 0 : index
    %c0_21 = arith.constant 0 : index
    %30 = vector.load %arg5[%c0_19, %c0_20, %c0_21] : memref<2x4x4xf32, #tpu.memory_space<vmem>>, vector<1x4x4xf32>
    %31 = vector.shape_cast %30 : vector<1x4x4xf32> to vector<4x4xf32>
    %32 = arith.mulf %29, %31 : vector<4x4xf32>
    %33 = vector.shape_cast %32 : vector<4x4xf32> to vector<1x4x4xf32>
    %cst_22 = arith.constant dense<0.000000e+00> : vector<1xf32>
    %34 = vector.multi_reduction <add>, %33, %cst_22 [1, 2] : vector<1x4x4xf32> to vector<1xf32>
    %35 = vector.shape_cast %34 : vector<1xf32> to vector<1x1x1xf32>
    %36 = vector.extract %35[0, 0, 0] : f32 from vector<1x1x1xf32>
    %37 = vector.broadcast %36 : f32 to vector<1x1xf32>
    %38 = vector.shape_cast %31 : vector<4x4xf32> to vector<1x4x4xf32>
    %cst_23 = arith.constant dense<0.000000e+00> : vector<1xf32>
    %39 = vector.multi_reduction <add>, %38, %cst_23 [1, 2] : vector<1x4x4xf32> to vector<1xf32>
    %40 = vector.shape_cast %39 : vector<1xf32> to vector<1x1x1xf32>
    %41 = vector.extract %40[0, 0, 0] : f32 from vector<1x1x1xf32>
    %42 = vector.broadcast %41 : f32 to vector<1x1xf32>
    %cst_24 = arith.constant 1.000000e+00 : f32
    %43 = vector.broadcast %cst_24 : f32 to vector<1x1xf32>
    %44 = arith.maximumf %42, %43 : vector<1x1xf32>
    %cst_25 = arith.constant 2.500000e-01 : f32
    %45 = vector.broadcast %cst_25 : f32 to vector<1x1xf32>
    %46 = arith.mulf %37, %45 : vector<1x1xf32>
    %47 = arith.divf %46, %44 : vector<1x1xf32>
    %c0_26 = arith.constant 0 : index
    %c0_27 = arith.constant 0 : index
    %c0_28 = arith.constant 0 : index
    %48 = vector.load %arg8[%c0_26, %c0_27, %c0_28] : memref<2x1x1xf32, #tpu.memory_space<vmem>>, vector<1x1x1xf32>
    %49 = vector.shape_cast %48 : vector<1x1x1xf32> to vector<1x1xf32>
    %50 = vector.shape_cast %47 : vector<1x1xf32> to vector<1x1x1xf32>
    tpu.vector_store %arg8[%c0_26, %c0_27, %c0_28], %50 {strides = array<i32>} : memref<2x1x1xf32, #tpu.memory_space<vmem>>, vector<1x1x1xf32>,
    %c1 = arith.constant 1 : index
    %c0_29 = arith.constant 0 : index
    %c0_30 = arith.constant 0 : index
    %51 = vector.load %arg1[%c1, %c0_29, %c0_30] : memref<2x4x16xbf16, #tpu.memory_space<vmem>>, vector<1x4x16xbf16>
    %52 = vector.shape_cast %51 : vector<1x4x16xbf16> to vector<4x16xbf16>
    %c1_31 = arith.constant 1 : index
    %c0_32 = arith.constant 0 : index
    %c0_33 = arith.constant 0 : index
    %53 = vector.load %arg2[%c1_31, %c0_32, %c0_33] : memref<2x16x16xbf16, #tpu.memory_space<vmem>>, vector<1x16x16xbf16>
    %54 = vector.shape_cast %53 : vector<1x16x16xbf16> to vector<16x16xbf16>
    %cst_34 = arith.constant dense<0.000000e+00> : vector<4x16xf32>
    %55 = tpu.matmul %52, %54, %cst_34 {dimension_numbers = #tpu.dot_dimension_numbers<[1], [1], [0], [0], [0, 0, 1, 0], [], []>} : vector<4x16xbf16>, vector<16x16xbf16>, vector<4x16xf32> -> vector<4x16xf32>
    %c0_35 = arith.constant 0 : index
    %c0_36 = arith.constant 0 : index
    %56 = vector.load %arg3[%c0_35, %c0_36] : memref<1x16xf32, #tpu.memory_space<vmem>>, vector<1x16xf32>
    %57 = vector.broadcast %56 : vector<1x16xf32> to vector<4x16xf32>
    %58 = arith.addf %55, %57 : vector<4x16xf32>
    %59 = arith.negf %58 : vector<4x16xf32>
    %60 = math.exp %59 : vector<4x16xf32>
    %cst_37 = arith.constant 1.000000e+00 : f32
    %61 = vector.broadcast %cst_37 : f32 to vector<4x16xf32>
    %62 = arith.addf %61, %60 : vector<4x16xf32>
    %63 = arith.divf %61, %62 : vector<4x16xf32>
    %c1_38 = arith.constant 1 : index
    %c0_39 = arith.constant 0 : index
    %c0_40 = arith.constant 0 : index
    %64 = vector.load %arg7[%c1_38, %c0_39, %c0_40] : memref<2x4x16xf32, #tpu.memory_space<vmem>>, vector<1x4x16xf32>
    %65 = vector.shape_cast %64 : vector<1x4x16xf32> to vector<4x16xf32>
    %66 = vector.shape_cast %63 : vector<4x16xf32> to vector<1x4x16xf32>
    tpu.vector_store %arg7[%c1_38, %c0_39, %c0_40], %66 {strides = array<i32>} : memref<2x4x16xf32, #tpu.memory_space<vmem>>, vector<1x4x16xf32>,
    %c1_41 = arith.constant 1 : index
    %c0_42 = arith.constant 0 : index
    %c0_43 = arith.constant 0 : index
    %67 = vector.load %arg4[%c1_41, %c0_42, %c0_43] : memref<2x4x16xf32, #tpu.memory_space<vmem>>, vector<1x4x16xf32>
    %68 = vector.shape_cast %67 : vector<1x4x16xf32> to vector<4x16xf32>
    %cst_44 = arith.constant 0.000000e+00 : f32
    %69 = vector.broadcast %cst_44 : f32 to vector<4x16xf32>
    %70 = arith.maximumf %58, %69 : vector<4x16xf32>
    %71 = arith.mulf %58, %68 : vector<4x16xf32>
    %72 = arith.subf %70, %71 : vector<4x16xf32>
    %73 = math.absf %58 : vector<4x16xf32>
    %cst_45 = arith.constant 0.000000e+00 : f32
    %74 = vector.broadcast %cst_45 : f32 to vector<4x16xf32>
    %75 = arith.subf %74, %73 : vector<4x16xf32>
    %76 = math.exp %75 : vector<4x16xf32>
    %77 = math.log1p %76 : vector<4x16xf32>
    %78 = arith.addf %72, %77 : vector<4x16xf32>
    %c0_46 = arith.constant 0 : index
    %c0_47 = arith.constant 0 : index
    %79 = vector.load %arg6[%c0_46, %c0_47] : memref<16x4xf32, #tpu.memory_space<vmem>>, vector<16x4xf32>
    %cst_48 = arith.constant dense<0.000000e+00> : vector<4x4xf32>
    %80 = tpu.matmul %78, %79, %cst_48 {dimension_numbers = #tpu.dot_dimension_numbers<[1], [0], [0], [1], [0, 0, 1, 1], [], []>} : vector<4x16xf32>, vector<16x4xf32>, vector<4x4xf32> -> vector<4x4xf32>
    %c1_49 = arith.constant 1 : index
    %c0_50 = arith.constant 0 : index
    %c0_51 = arith.constant 0 : index
    %81 = vector.load %arg5[%c1_49, %c0_50, %c0_51] : memref<2x4x4xf32, #tpu.memory_space<vmem>>, vector<1x4x4xf32>
    %82 = vector.shape_cast %81 : vector<1x4x4xf32> to vector<4x4xf32>
    %83 = arith.mulf %80, %82 : vector<4x4xf32>
    %84 = vector.shape_cast %83 : vector<4x4xf32> to vector<1x4x4xf32>
    %cst_52 = arith.constant dense<0.000000e+00> : vector<1xf32>
    %85 = vector.multi_reduction <add>, %84, %cst_52 [1, 2] : vector<1x4x4xf32> to vector<1xf32>
    %86 = vector.shape_cast %85 : vector<1xf32> to vector<1x1x1xf32>
    %87 = vector.extract %86[0, 0, 0] : f32 from vector<1x1x1xf32>
    %88 = vector.broadcast %87 : f32 to vector<1x1xf32>
    %89 = vector.shape_cast %82 : vector<4x4xf32> to vector<1x4x4xf32>
    %cst_53 = arith.constant dense<0.000000e+00> : vector<1xf32>
    %90 = vector.multi_reduction <add>, %89, %cst_53 [1, 2] : vector<1x4x4xf32> to vector<1xf32>
    %91 = vector.shape_cast %90 : vector<1xf32> to vector<1x1x1xf32>
    %92 = vector.extract %91[0, 0, 0] : f32 from vector<1x1x1xf32>
    %93 = vector.broadcast %92 : f32 to vector<1x1xf32>
    %cst_54 = arith.constant 1.000000e+00 : f32
    %94 = vector.broadcast %cst_54 : f32 to vector<1x1xf32>
    %95 = arith.maximumf %93, %94 : vector<1x1xf32>
    %cst_55 = arith.constant 2.500000e-01 : f32
    %96 = vector.broadcast %cst_55 : f32 to vector<1x1xf32>
    %97 = arith.mulf %88, %96 : vector<1x1xf32>
    %98 = arith.divf %97, %95 : vector<1x1xf32>
    %c1_56 = arith.constant 1 : index
    %c0_57 = arith.constant 0 : index
    %c0_58 = arith.constant 0 : index
    %99 = vector.load %arg8[%c1_56, %c0_57, %c0_58] : memref<2x1x1xf32, #tpu.memory_space<vmem>>, vector<1x1x1xf32>
    %100 = vector.shape_cast %99 : vector<1x1x1xf32> to vector<1x1xf32>
    %101 = vector.shape_cast %98 : vector<1x1xf32> to vector<1x1x1xf32>
    tpu.vector_store %arg8[%c1_56, %c0_57, %c0_58], %101 {strides = array<i32>} : memref<2x1x1xf32, #tpu.memory_space<vmem>>, vector<1x1x1xf32>,
    return
  }
  func.func @transform_0(%arg0: i32) -> (i32, i32, i32) {
    %c0_i32 = arith.constant 0 : i32
    %c0_i32_0 = arith.constant 0 : i32
    %c0_i32_1 = arith.constant 0 : i32
    return %arg0, %c0_i32, %c0_i32_0 : i32, i32, i32
  }
  func.func @transform_1(%arg0: i32) -> (i32, i32, i32) {
    %c0_i32 = arith.constant 0 : i32
    %c0_i32_0 = arith.constant 0 : i32
    %c0_i32_1 = arith.constant 0 : i32
    return %arg0, %c0_i32, %c0_i32_0 : i32, i32, i32
  }
  func.func @transform_2(%arg0: i32) -> (i32, i32) {
    %c0_i32 = arith.constant 0 : i32
    %c0_i32_0 = arith.constant 0 : i32
    %c0_i32_1 = arith.constant 0 : i32
    return %c0_i32, %c0_i32_0 : i32, i32
  }
  func.func @transform_3(%arg0: i32) -> (i32, i32, i32) {
    %c0_i32 = arith.constant 0 : i32
    %c0_i32_0 = arith.constant 0 : i32
    %c0_i32_1 = arith.constant 0 : i32
    return %arg0, %c0_i32, %c0_i32_0 : i32, i32, i32
  }
  func.func @transform_4(%arg0: i32) -> (i32, i32, i32) {
    %c0_i32 = arith.constant 0 : i32
    %c0_i32_0 = arith.constant 0 : i32
    %c0_i32_1 = arith.constant 0 : i32
    return %arg0, %c0_i32, %c0_i32_0 : i32, i32, i32
  }
  func.func @transform_5(%arg0: i32) -> (i32, i32) {
    %c0_i32 = arith.constant 0 : i32
    %c0_i32_0 = arith.constant 0 : i32
    %c0_i32_1 = arith.constant 0 : i32
    return %c0_i32, %c0_i32_0 : i32, i32
  }
  func.func @transform_6(%arg0: i32) -> (i32, i32, i32) {
    %c0_i32 = arith.constant 0 : i32
    %c0_i32_0 = arith.constant 0 : i32
    %c0_i32_1 = arith.constant 0 : i32
    return %arg0, %c0_i32, %c0_i32_0 : i32, i32, i32
  }
  func.func @transform_7(%arg0: i32) -> (i32, i32, i32) {
    %c0_i32 = arith.constant 0 : i32
    %c0_i32_0 = arith.constant 0 : i32
    %c0_i32_1 = arith.constant 0 : i32
    return %arg0, %c0_i32, %c0_i32_0 : i32, i32, i32
  }
}

</mosaic_0001>

<bundles_post_ra>
// kernel: tile.8
= control target key start
LH: loop header
LB: loop body
LE: loop exit
PB: predicated region body
PF: predicated region fallthrough
CT: control target
= control target key end

     0   :  { %s22_s0 = inlined_call_operand.vmem [shape: f32[4], index: 0, kind: input, shape index: {}]   ;;  %s23_s1 = inlined_call_operand.vmem [shape: f32[4,4], index: 1, kind: output, shape index: {}]  }
   0x1   :  { %v4_v0 = vld [vmem:[%s22_s0] ss:$0 sm:$0xff] }
   0x2   :  { %5 = vst [vmem:[%s23_s1] sm:$0xf] %v4_v0 }

// kernel: tile.9
= control target key start
LH: loop header
LB: loop body
LE: loop exit
PB: predicated region body
PF: predicated region fallthrough
CT: control target
= control target key end

     0   :  { %vm7_vm0 = vcmask 31744   ;;  %s37_s8 = smov 4   ;;  %s38_s9 = smov 8   ;;  %vm13_vm1 = vcmask 130144   ;;  %vm19_vm2 = vcmask 97344   ;;  %vm25_vm3 = vcmask 64544   ;;  %s55_s0 = inlined_call_operand.vmem [shape: f32[4,4], index: 0, kind: input, shape index: {}]   ;;  %s56_s1 = inlined_call_operand.vmem [shape: f32[1,16], index: 1, kind: output, shape index: {}]  }
   0x1   :  { %v4_v0 = vld [vmem:[%s55_s0] sm:$0xf]  ;;  %s36_s0 = smov 12  }
   0x2   :  { %5 = vst [vmem:[#allocation1] sm:$0xf] %v4_v0 }
   0x9   :  { %v10_v1 = vld [vmem:[#allocation1 + $0x3] sm:$0x1]   ;;  %v22_v2 = vld [vmem:[#allocation1 + $0x1] sm:$0x1]   ;;  %v6_v3 = vld [vmem:[#allocation1] sm:$0x1]  }
   0xa   :  { %11 = vrot.lane.b32.xlu0 %v10_v1, %s36_s0  ;;  %23 = vrot.lane.b32.xlu1 %v22_v2, %s37_s8  ;;  %v16_v4 = vld [vmem:[#allocation1 + $0x2] sm:$0x1]   ;;  %8 = vst.msk [vmem:[#allocation0] sm:$0x1] %vm7_vm0, %v6_v3  }
   0xe   :  { %17 = vrot.lane.b32.xlu0 %v16_v4, %s38_s9 }
  0x7c   :  { %v12_v5 = vpop.permute.xlu0 %11   ;;  %v24_v6 = vpop.permute.xlu1 %23  }
  0x7d   :  { %14 = vst.msk [vmem:[#allocation0] sm:$0x1] %vm13_vm1, %v12_v5  }
  0x80   :  { %v18_v7 = vpop.permute.xlu0 %17  }
  0x81   :  { %20 = vst.msk [vmem:[#allocation0] sm:$0x1] %vm19_vm2, %v18_v7  }
  0x82   :  { %26 = vst.msk [vmem:[#allocation0] sm:$0x1] %vm25_vm3, %v24_v6  }
  0x89   :  { %v30_v8 = vld [vmem:[#allocation0] sm:$0x1] }
  0x8a   :  { %32 = vst [vmem:[%s56_s1] sm:$0x1] %v30_v8 }

// kernel: ski_forward.2
= control target key start
LH: loop header
LB: loop body
LE: loop exit
PB: predicated region body
PF: predicated region fallthrough
CT: control target
= control target key end

     0   :  { %vm52_vm0 = vcmask 261120   ;;  %v392_v8 = vmov 0.0   ;;  %vm393_vm1 = vmmov 0   ;;  %vm116_vm2 = vcmask 130048   ;;  %s482_s1 = inlined_call_operand.vmem [shape: bf16[32,16], index: 1, kind: input, shape index: {}]   ;;  %s483_s0 = inlined_call_operand.vmem [shape: f32[32,32], index: 0, kind: input, shape index: {}]   ;;  %s484_s3 = inlined_call_operand.vmem [shape: bf16[16,64], index: 3, kind: input, shape index: {}]   ;;  %s485_s2 = inlined_call_operand.vmem [shape: f32[1,16], index: 2, kind: input, shape index: {}]   ;;  %s486_s4 = inlined_call_operand.vmem [shape: f32[2,4,16], index: 4, kind: input, shape index: {}]   ;;  %s487_s5 = inlined_call_operand.vmem [shape: bf16[2,4,16], index: 5, kind: output, shape index: {0}]   ;;  %s488_s6 = inlined_call_operand.vmem [shape: bf16[2,4,64], index: 6, kind: output, shape index: {1}]  }
   0x1   :  { %v388_v0 = vld [vmem:[%s482_s1] sm:$0xff]   ;;  %v389_v1 = vld [vmem:[%s482_s1 + $0x8] sm:$0xff]   ;;  %v25_v5 = vld [vmem:[%s483_s0 + $0x10] sm:$0xff]  ;;  %362 = vmatprep.subr.bf16.mxu1 %v392_v8  ;;  %364 = vmatprep.mubr.msk.bf16.mxu1 %vm393_vm1, %v392_v8  ;;  %vm161_vm3 = vcmask 123904   ;;  %vm215_vm4 = vcmask 517120  }
   0x2   :  { %354 = vmatprep.subr.bf16.mxu0 %v388_v0  ;;  %v23_v2 = vld [vmem:[%s483_s0] sm:$0xff]  ;;  %v24_v3 = vld [vmem:[%s483_s0 + $0x8] sm:$0xff]  ;;  %v26_v6 = vld [vmem:[%s483_s0 + $0x18] sm:$0xff] }
   0x3   :  { %355 = vmatpush3.bf16.msra.mxu0 %v388_v0  ;;  %v27_v4 = vpack.c.bf16 %v24_v3, %v23_v2  ;;  %v28_v7 = vpack.c.bf16 %v26_v6, %v25_v5  ;;  %v328_v9 = vld [vmem:[%s485_s2] ss:$0 sm:$0xff]  ;;  %v336_v20 = vld [vmem:[%s486_s4 + $0x4] sm:$0xf] }
   0x4   :  { %356 = vmatprep.subr.bf16.mxu0 %v389_v1  ;;  %v114_v23 = vld [vmem:[%s486_s4] sm:$0xf]  ;;  %v219_v26 = vpack.c.bf16 %v336_v20, %v336_v20 }
   0x5   :  { %358 = vmatprep.mubr.msk.bf16.mxu0 %vm52_vm0, %v27_v4  ;;  %v115_v27 = vpack.c.bf16 %v114_v23, %v114_v23  ;;  %v390_v28 = vld [vmem:[%s484_s3] sm:$0xff]  }
   0x6   :  { %v391_v31 = vld [vmem:[%s484_s3] sm:$0xff]  }
   0x7   :  { %357 = vmatpush3.bf16.msra.mxu0 %v389_v1 }
   0x8   :  { %374 = vmatprep.subr.bf16.mxu0 %v392_v8 }
   0xa   :  { %359 = vmatmul.mubr.msk.bf16.vlgmr.msra.gmra.mrb[0].mxu0 %vm52_vm0, %v28_v7 }
   0xb   :  { %376 = vmatprep.mubr.msk.bf16.mxu0 %vm393_vm1, %v392_v8 }
  0xdd   :  { %v360_v10 = vpop.f32.mrb[0].mxu0 }
  0xde   :  { %v102_v11 = vadd.f32 %v360_v10, %v328_v9  ;;  %v93_v12 = vpop.f32.mrb[1].mxu0 }
  0xdf   :  { %v94_v13 = vadd.f32 %v328_v9, %v93_v12  ;;  %v361_v14 = vpop.f32.mrb[2].mxu0 }
  0xe0   :  { %v105_v15 = vadd.f32 %v361_v14, %v328_v9  ;;  %v96_v16 = vpop.f32.mrb[3].mxu0  ;;  %v110_v18 = vmax.f32 %v102_v11, 0.0 }
  0xe1   :  { %v97_v17 = vadd.f32 %v328_v9, %v96_v16  ;;  %v108_v21 = vmax.f32 %v94_v13, 0.0 }
  0xe2   :  { %v111_v19 = vmax.f32 %v105_v15, 0.0 }
  0xe3   :  { %v109_v22 = vmax.f32 %v97_v17, 0.0 }
  0xe4   :  { %v113_v24 = vpack.c.bf16 %v111_v19, %v110_v18 }
  0xe5   :  { %v112_v25 = vpack.c.bf16 %v109_v22, %v108_v21 }
  0xe6   :  { %375 = vmatpush3.bf16.msra.mxu0 %v113_v24 }
  0xe7   :  { %363 = vmatpush3.bf16.msra.mxu1 %v112_v25 }
  0xe8   :  { %368 = vmatprep.subr.bf16.mxu1 %v392_v8 }
  0xe9   :  { %377 = vmatmul.mubr.msk.bf16.vlgmr.msra.gmra.mrb[4].mxu0 %vm116_vm2, %v219_v26 }
  0xea   :  { %365 = vmatmul.mubr.msk.bf16.vlgmr.msra.gmra.mrb[0].mxu1 %vm116_vm2, %v115_v27 }
  0xeb   :  { %369 = vmatpush3.bf16.msra.mxu1 %v390_v28  ;;  %370 = vmatprep.mubr.msk.bf16.mxu1 %vm393_vm1, %v392_v8 }
  0xec   :  { %380 = vmatprep.subr.bf16.mxu1 %v392_v8 }
 0x1bc   :  { %v257_v29 = vpop.f32.mrb[4].mxu0 }
 0x1bd   :  { %v154_v30 = vpop.f32.mrb[0].mxu1  ;;  %v263_v32 = vpack.c.bf16 %v257_v29, %v257_v29  ;;  %v378_v33 = vpop.f32.mrb[5].mxu0 }
 0x1be   :  { %v160_v34 = vpack.c.bf16 %v154_v30, %v154_v30  ;;  %v366_v35 = vpop.f32.mrb[1].mxu1  ;;  %v260_v36 = vpop.f32.mrb[6].mxu0 }
 0x1bf   :  { %v157_v37 = vpop.f32.mrb[2].mxu1  ;;  %338 = vst.msk [vmem:[%s487_s5 + $0x2] sm:$0x3] %vm161_vm3, %v263_v32  ;;  %v379_v38 = vpop.f32.mrb[7].mxu0 }
 0x1c0   :  { %162 = vst.msk [vmem:[%s487_s5] sm:$0x3] %vm161_vm3, %v160_v34  ;;  %v367_v39 = vpop.f32.mrb[3].mxu1  ;;  %371 = vmatmul.mubr.msk.bf16.vlgmr.msra.gmra.mrb[4].mxu1 %vm116_vm2, %v160_v34 }
 0x1c1   :  { %381 = vmatpush3.bf16.msra.mxu1 %v391_v31  ;;  %382 = vmatprep.mubr.msk.bf16.mxu1 %vm393_vm1, %v392_v8 }
 0x1c8   :  { %383 = vmatmul.mubr.msk.bf16.vlgmr.msra.gmra.mrb[8].mxu1 %vm116_vm2, %v263_v32 }
 0x293   :  { %v208_v40 = vpop.f32.mrb[4].mxu1 }
 0x294   :  { %v214_v41 = vpack.c.bf16 %v208_v40, %v208_v40  ;;  %v372_v42 = vpop.f32.mrb[5].mxu1 }
 0x295   :  { %v211_v43 = vpop.f32.mrb[6].mxu1 }
 0x296   :  { %216 = vst.msk [vmem:[%s488_s6] sm:$0x3] %vm215_vm4, %v214_v41  ;;  %v373_v44 = vpop.f32.mrb[7].mxu1 }
 0x29b   :  { %v311_v45 = vpop.f32.mrb[8].mxu1 }
 0x29c   :  { %v317_v46 = vpack.c.bf16 %v311_v45, %v311_v45  ;;  %v384_v47 = vpop.f32.mrb[9].mxu1 }
 0x29d   :  { %v314_v48 = vpop.f32.mrb[10].mxu1 }
 0x29e   :  { %341 = vst.msk [vmem:[%s488_s6 + $0x2] sm:$0x3] %vm215_vm4, %v317_v46  ;;  %v385_v49 = vpop.f32.mrb[11].mxu1 }

// kernel: ski_forward.3
= control target key start
LH: loop header
LB: loop body
LE: loop exit
PB: predicated region body
PF: predicated region fallthrough
CT: control target
= control target key end

     0   :  { %vm41_vm0 = vcmask 130048   ;;  %v516_v0 = vmov 0.0   ;;  %vm517_vm1 = vmmov 0   ;;  %v518_v7 = vmov 0.0|0.0   ;;  %s628_s1 = inlined_call_operand.vmem [shape: bf16[2,16,16], index: 1, kind: input, shape index: {}]   ;;  %s629_s0 = inlined_call_operand.vmem [shape: bf16[2,4,16], index: 0, kind: input, shape index: {}]   ;;  %s630_s5 = inlined_call_operand.vmem [shape: f32[16,4], index: 5, kind: input, shape index: {}]   ;;  %s631_s2 = inlined_call_operand.vmem [shape: f32[1,16], index: 2, kind: input, shape index: {}]   ;;  %s632_s3 = inlined_call_operand.vmem [shape: f32[2,4,16], index: 3, kind: input, shape index: {}]   ;;  %s633_s6 = inlined_call_operand.vmem [shape: f32[2,4,16], index: 6, kind: output, shape index: {0}]   ;;  %s634_s4 = inlined_call_operand.vmem [shape: f32[2,4,4], index: 4, kind: input, shape index: {}]   ;;  %s635_s7 = inlined_call_operand.vmem [shape: f32[2,1,1], index: 7, kind: output, shape index: {1}]  }
   0x1   :  { %451 = vmatprep.subr.bf16.mxu0 %v516_v0  ;;  %v494_v1 = vld [vmem:[%s628_s1] sm:$0xff]   ;;  %453 = vmatprep.mubr.msk.bf16.mxu0 %vm517_vm1, %v516_v0  ;;  %v115_v5 = vld [vmem:[%s630_s5 + $0x8] sm:$0xff]  ;;  %vm94_vm2 = vcmask 125952   ;;  %vm191_vm4 = vcmask 27648   ;;  %vm218_vm6 = vcmask 0  }
   0x2   :  { %461 = vmatprep.mubr.msk.f32.mxu1 %vm517_vm1, %v516_v0  ;;  %v46_v2 = vsel %vm41_vm0, %v494_v1, 0  ;;  %v26_v3 = vld [vmem:[%s629_s0] sm:$0x3]  ;;  %477 = vmatprep.subr.bf16.mxu1 %v518_v7  ;;  %v495_v30 = vld [vmem:[%s628_s1 + $0x8] sm:$0xff]   ;;  %v429_v37 = vld [vmem:[%s629_s0 + $0x2] sm:$0x3] }
   0x3   :  { %452 = vmatpush3.bf16.xpose.msra.mxu0 %v46_v2  ;;  %v114_v4 = vld [vmem:[%s630_s5] sm:$0xff]  ;;  %v241_v36 = vsel %vm41_vm0, %v495_v30, 0 }
   0x4   :  { %v478_v6 = vpack.c.bf16 %v115_v5, %v114_v4  ;;  %480 = vmatprep.subr.bf16.mxu0 %v518_v7  ;;  %v424_v8 = vld [vmem:[%s631_s2] ss:$0 sm:$0xff]  ;;  %v437_v58 = vld [vmem:[%s632_s3 + $0x4] sm:$0xf] }
   0x5   :  { %v96_v23 = vld [vmem:[%s632_s3] sm:$0xf] }
   0x6   :  { %479 = vmatpush3.bf16.msra.mxu1 %v478_v6  ;;  %v189_v38 = vld [vmem:[%s634_s4] sm:$0xf] }
   0x7   :  { %464 = vmatprep.subr.bf16.mxu1 %v516_v0  ;;  %v203_v43 = vsel %vm191_vm4, %v189_v38, 0.0 }
   0xa   :  { %454 = vmatmul.mubr.msk.bf16.vlgmr.msra.gmra.mrb[0].mxu0 %vm41_vm0, %v26_v3 }
   0xb   :  { %474 = vmatprep.mubr.msk.f32.mxu0 %vm517_vm1, %v516_v0  ;;  %482 = vmatpush3.bf16.msra.mxu0 %v478_v6 }
  0xdd   :  { %v82_v9 = vpop.f32.mrb[0].mxu0 }
  0xde   :  { %v83_v10 = vadd.f32 %v424_v8, %v82_v9  ;;  %v455_v11 = vpop.f32.mrb[1].mxu0 }
  0xdf   :  { %v85_v12 = vpop.f32.mrb[2].mxu0 }
  0xe0   :  { %v427_v13 = vmul.f32 -1.442695, %v83_v10  ;;  %v100_v14 = vand.u32 2147483647, %v83_v10  ;;  %v456_v15 = vpop.f32.mrb[3].mxu0  ;;  %v97_v26 = vmax.f32 %v83_v10, 0.0  ;;  %v98_v27 = vmul.f32 %v96_v23, %v83_v10 }
  0xe2   :  { %496 = vpow2.f32 %v427_v13  ;;  %v101_v16 = vsub.f32 0.0, %v100_v14  ;;  %v99_v33 = vsub.f32 %v97_v26, %v98_v27  ;;  %v439_v26 = vld [vmem:[%s634_s4 + $0x4] sm:$0xf] }
  0xe4   :  { %v102_v17 = vmul.f32 1.442695, %v101_v16 }
  0xe6   :  { %498 = vpow2.f32 %v102_v17 }
  0xec   :  { %v497_v18 = vpop.eup %496 }
  0xed   :  { %v91_v19 = vadd.f32 1.0, %v497_v18 }
  0xef   :  { %500 = vrcp.f32 %v91_v19 }
  0xf0   :  { %v499_v20 = vpop.eup %498 }
  0xf1   :  { %v104_v21 = vadd.f32 1.0, %v499_v20  ;;  %v107_v22 = vmul.f32 -0.5, %v499_v20  ;;  %v110_v28 = vand.u32 2147483647, %v499_v20 }
  0xf3   :  { %502 = vlog2.f32 %v104_v21  ;;  %v108_v25 = vadd.f32 1.0, %v107_v22  ;;  %vm111_vm3 = vcmp.lt.f32.partialorder %v110_v28, 0.0004427343 }
  0xf5   :  { %v109_v32 = vmul.f32 %v499_v20, %v108_v25 }
  0xf9   :  { %v501_v24 = vpop.eup %500 }
  0xfa   :  { %95 = vst.msk [vmem:[%s633_s6] sm:$0xf] %vm94_vm2, %v501_v24 }
  0xfd   :  { %v503_v29 = vpop.eup %502 }
  0xfe   :  { %v106_v31 = vmul.f32 0.6931472, %v503_v29 }
 0x100   :  { %v112_v34 = vsel %vm111_vm3, %v109_v32, %v106_v31  ;;  %v399_v31 = vsel %vm191_vm4, %v439_v26, 0.0 }
 0x101   :  { %v113_v35 = vadd.f32 %v112_v34, %v99_v33 }
 0x103   :  { %462 = vmatmul.mubr.msk.f32.vlgmr.msra.gmra.mrb[0].mxu1 %vm41_vm0, %v113_v35 }
 0x104   :  { %465 = vmatpush3.bf16.xpose.msra.mxu1 %v241_v36  ;;  %466 = vmatprep.mubr.msk.bf16.mxu1 %vm517_vm1, %v516_v0 }
 0x10b   :  { %467 = vmatmul.mubr.msk.bf16.vlgmr.msra.gmra.mrb[4].mxu1 %vm41_vm0, %v429_v37 }
 0x1d6   :  { %v185_v39 = vpop.f32.mrb[0].mxu1 }
 0x1d7   :  { %v190_v40 = vmul.f32 %v189_v38, %v185_v39  ;;  %v463_v41 = vpop.f32.mrb[1].mxu1 }
 0x1d9   :  { %v192_v42 = vsel %vm191_vm4, %v190_v40, 0.0 }
 0x1da   :  { %193 = vadd.xlane.f32.xlu0 %v192_v42 }
 0x1de   :  { %v277_v44 = vpop.f32.mrb[4].mxu1  ;;  %204 = vadd.xlane.f32.xlu0 %v203_v43 }
 0x1df   :  { %v278_v45 = vadd.f32 %v424_v8, %v277_v44  ;;  %v468_v46 = vpop.f32.mrb[5].mxu1 }
 0x1e0   :  { %v280_v47 = vpop.f32.mrb[6].mxu1 }
 0x1e1   :  { %v435_v48 = vmul.f32 -1.442695, %v278_v45  ;;  %v296_v49 = vand.u32 2147483647, %v278_v45  ;;  %v469_v50 = vpop.f32.mrb[7].mxu1  ;;  %v293_v61 = vmax.f32 %v278_v45, 0.0  ;;  %v294_v62 = vmul.f32 %v437_v58, %v278_v45 }
 0x1e3   :  { %504 = vpow2.f32 %v435_v48  ;;  %v297_v51 = vsub.f32 0.0, %v296_v49  ;;  %v295_v3 = vsub.f32 %v293_v61, %v294_v62 }
 0x1e5   :  { %v298_v52 = vmul.f32 1.442695, %v297_v51 }
 0x1e7   :  { %506 = vpow2.f32 %v298_v52 }
 0x1ed   :  { %v505_v53 = vpop.eup %504 }
 0x1ee   :  { %v286_v54 = vadd.f32 1.0, %v505_v53 }
 0x1f0   :  { %508 = vrcp.f32 %v286_v54 }
 0x1f1   :  { %v507_v55 = vpop.eup %506 }
 0x1f2   :  { %v300_v56 = vadd.f32 1.0, %v507_v55  ;;  %v303_v57 = vmul.f32 -0.5, %v507_v55  ;;  %v306_v63 = vand.u32 2147483647, %v507_v55 }
 0x1f4   :  { %510 = vlog2.f32 %v300_v56  ;;  %v304_v60 = vadd.f32 1.0, %v303_v57  ;;  %vm307_vm5 = vcmp.lt.f32.partialorder %v306_v63, 0.0004427343 }
 0x1f6   :  { %v305_v2 = vmul.f32 %v507_v55, %v304_v60 }
 0x1fa   :  { %v509_v59 = vpop.eup %508 }
 0x1fb   :  { %436 = vst.msk [vmem:[%s633_s6 + $0x4] sm:$0xf] %vm94_vm2, %v509_v59 }
 0x1fe   :  { %v511_v0 = vpop.eup %510 }
 0x1ff   :  { %v302_v1 = vmul.f32 0.6931472, %v511_v0 }
 0x201   :  { %v308_v4 = vsel %vm307_vm5, %v305_v2, %v302_v1 }
 0x202   :  { %v309_v5 = vadd.f32 %v308_v4, %v295_v3 }
 0x204   :  { %475 = vmatmul.mubr.msk.f32.vlgmr.msra.gmra.mrb[4].mxu0 %vm41_vm0, %v309_v5 }
 0x267   :  { %v194_v6 = vpop.xlane.xlu0 %193 }
 0x268   :  { %v195_v7 = vrot.slane %v194_v6, 4 }
 0x26a   :  { %v196_v8 = vadd.f32 %v195_v7, %v194_v6 }
 0x26b   :  { %v205_v9 = vpop.xlane.xlu0 %204 }
 0x26c   :  { %v197_v10 = vrot.slane %v196_v8, 2  ;;  %v206_v11 = vrot.slane %v205_v9, 4 }
 0x26e   :  { %v207_v12 = vadd.f32 %v206_v11, %v205_v9  ;;  %v198_v13 = vadd.f32 %v197_v10, %v196_v8 }
 0x270   :  { %v208_v14 = vrot.slane %v207_v12, 2  ;;  %v199_v15 = vrot.slane %v198_v13, 1 }
 0x272   :  { %v209_v16 = vadd.f32 %v208_v14, %v207_v12  ;;  %v200_v17 = vadd.f32 %v199_v15, %v198_v13 }
 0x274   :  { %483 = vpush %v200_v17  ;;  %v210_v18 = vrot.slane %v209_v16, 1 }
 0x276   :  { %v211_v19 = vadd.f32 %v210_v18, %v209_v16 }
 0x278   :  { %485 = vpush %v211_v19 }
 0x2a5   :  { %s484_s3 = spop %483 }
 0x2a6   :  { %v202_v22 = vstv %s484_s3 }
 0x2a7   :  { %v215_v23 = vmul.f32 0.25, %v202_v22 }
 0x2a9   :  { %s486_s6 = spop %485 }
 0x2aa   :  { %v213_v20 = vstv %s486_s6 }
 0x2ab   :  { %v214_v21 = vmax.f32 %v213_v20, 1.0 }
 0x2ad   :  { %512 = vrcp.f32 %v214_v21 }
 0x2b7   :  { %v513_v24 = vpop.eup %512 }
 0x2b8   :  { %v217_v25 = vmul.f32 %v513_v24, %v215_v23 }
 0x2ba   :  { %219 = vst.msk [vmem:[%s635_s7] sm:$0x1] %vm218_vm6, %v217_v25 }
 0x2d7   :  { %v381_v27 = vpop.f32.mrb[4].mxu0 }
 0x2d8   :  { %v387_v28 = vmul.f32 %v439_v26, %v381_v27  ;;  %v476_v29 = vpop.f32.mrb[5].mxu0 }
 0x2da   :  { %v388_v30 = vsel %vm191_vm4, %v387_v28, 0.0 }
 0x2db   :  { %389 = vadd.xlane.f32.xlu1 %v388_v30 }
 0x2df   :  { %400 = vadd.xlane.f32.xlu1 %v399_v31 }
 0x368   :  { %v390_v32 = vpop.xlane.xlu1 %389 }
 0x369   :  { %v391_v33 = vrot.slane %v390_v32, 4 }
 0x36b   :  { %v392_v34 = vadd.f32 %v391_v33, %v390_v32 }
 0x36c   :  { %v401_v35 = vpop.xlane.xlu1 %400 }
 0x36d   :  { %v393_v36 = vrot.slane %v392_v34, 2  ;;  %v402_v37 = vrot.slane %v401_v35, 4 }
 0x36f   :  { %v403_v38 = vadd.f32 %v402_v37, %v401_v35  ;;  %v394_v39 = vadd.f32 %v393_v36, %v392_v34 }
 0x371   :  { %v404_v40 = vrot.slane %v403_v38, 2  ;;  %v395_v41 = vrot.slane %v394_v39, 1 }
 0x373   :  { %v405_v42 = vadd.f32 %v404_v40, %v403_v38  ;;  %v396_v43 = vadd.f32 %v395_v41, %v394_v39 }
 0x375   :  { %487 = vpush %v396_v43  ;;  %v406_v44 = vrot.slane %v405_v42, 1 }
 0x377   :  { %v407_v45 = vadd.f32 %v406_v44, %v405_v42 }
 0x379   :  { %489 = vpush %v407_v45 }
 0x3a6   :  { %s488_s4 = spop %487 }
 0x3a7   :  { %v398_v48 = vstv %s488_s4 }
 0x3a8   :  { %v411_v49 = vmul.f32 0.25, %v398_v48 }
 0x3aa   :  { %s490_s25 = spop %489 }
 0x3ab   :  { %v409_v46 = vstv %s490_s25 }
 0x3ac   :  { %v410_v47 = vmax.f32 %v409_v46, 1.0 }
 0x3ae   :  { %514 = vrcp.f32 %v410_v47 }
 0x3b8   :  { %v515_v50 = vpop.eup %514 }
 0x3b9   :  { %v413_v51 = vmul.f32 %v515_v50, %v411_v49 }
 0x3bb   :  { %440 = vst.msk [vmem:[%s635_s7 + $0x1] sm:$0x1] %vm218_vm6, %v413_v51 }

</bundles_post_ra>
